<compile_context>
chip_gen: v7x
topology: tpu7x:2x2x1
jax: 0.10.0
libtpu: 0.0.40
codegen_flags: <defaults>
</compile_context>

<pallas_src>
import math
import functools

import jax
import jax.numpy as jnp
from jax.experimental import pallas as pl
from jax.experimental.pallas import tpu as pltpu


# ----------------------------------------------------------------------------
# Generation-aware VMEM budget and tile preferences.
# ----------------------------------------------------------------------------
def _vmem_limit_bytes():
    try:
        cap = int(pltpu.get_tpu_info().vmem_capacity_bytes)
    except Exception:
        cap = 64 * 1024 * 1024
    return min((cap * 7) // 10, 96 * 1024 * 1024)


_VMEM_LIMIT = int(_vmem_limit_bytes())
_BIG_VMEM = _VMEM_LIMIT >= 80 * 1024 * 1024   # v5e/v6e (128 MiB) vs v7x (64 MiB)
_TM = 512 if _BIG_VMEM else 256
_TN = 512 if _BIG_VMEM else 256
_TK = 512


def _tile(dim, pref):
    """Return (tile, padded_dim).  Full-dim block when dim <= pref (always legal);
    otherwise the preferred (8/128-aligned) tile with zero padding to a multiple."""
    if dim <= pref:
        return dim, dim
    padded = ((dim + pref - 1) // pref) * pref
    return pref, padded


def _pad_to(x, shape):
    pads = [(0, s - d) for d, s in zip(x.shape, shape)]
    if any(p[1] for p in pads):
        return jnp.pad(x, pads)
    return x


def _gelu(y):
    # TODO(synk): open_clip's nn.GELU is exact erf; tanh approximation used here.
    return 0.5 * y * (1.0 + jnp.tanh(0.7978845608028654 * (y + 0.044715 * y * y * y)))


# ----------------------------------------------------------------------------
# Tiled linear:  y = x @ w + b  (+ optional GELU, optional residual add)
# grid (Mp//tm, Np//tn, Kp//tk) with f32 VMEM accumulator.  Output bf16 by default.
# ----------------------------------------------------------------------------
def _linear_kernel(act, has_res, *refs):
    if has_res:
        x_ref, w_ref, b_ref, res_ref, o_ref, acc_ref = refs
    else:
        x_ref, w_ref, b_ref, o_ref, acc_ref = refs
        res_ref = None
    k = pl.program_id(2)

    @pl.when(k == 0)
    def _():
        acc_ref[...] = jnp.zeros_like(acc_ref)

    acc_ref[...] += jnp.dot(
        x_ref[...].astype(jnp.bfloat16),
        w_ref[...].astype(jnp.bfloat16),
        preferred_element_type=jnp.float32)

    @pl.when(k == pl.num_programs(2) - 1)
    def _():
        y = acc_ref[...] + b_ref[...].astype(jnp.float32)
        if act == "gelu":
            y = _gelu(y)
        if has_res:
            y = y + res_ref[...].astype(jnp.float32)
        o_ref[...] = y.astype(o_ref.dtype)


def linear(x, w, b, act=None, residual=None, out_dtype=jnp.bfloat16):
    """x: (M, K), w: (K, N) bf16/f32, b: (N,). Optional residual (M, N)."""
    M, K = x.shape
    N = w.shape[1]
    tm, Mp = _tile(M, _TM)
    tn, Np = _tile(N, _TN)
    tk, Kp = _tile(K, _TK)

    xp = _pad_to(x, (Mp, Kp))
    wp = _pad_to(w, (Kp, Np))
    bp = _pad_to(b.reshape(1, N), (1, Np))

    in_specs = [
        pl.BlockSpec((tm, tk), lambda i, j, k: (i, k)),
        pl.BlockSpec((tk, tn), lambda i, j, k: (k, j)),
        pl.BlockSpec((1, tn), lambda i, j, k: (0, j)),
    ]
    args = [xp, wp, bp]
    if residual is not None:
        in_specs.append(pl.BlockSpec((tm, tn), lambda i, j, k: (i, j)))
        args.append(_pad_to(residual, (Mp, Np)))

    out = pl.pallas_call(
        functools.partial(_linear_kernel, act, residual is not None),
        out_shape=jax.ShapeDtypeStruct((Mp, Np), out_dtype),
        grid=(Mp // tm, Np // tn, Kp // tk),
        in_specs=in_specs,
        out_specs=pl.BlockSpec((tm, tn), lambda i, j, k: (i, j)),
        scratch_shapes=[pltpu.VMEM((tm, tn), jnp.float32)],
        compiler_params=pltpu.CompilerParams(
            dimension_semantics=("parallel", "parallel", "arbitrary"),
            vmem_limit_bytes=_VMEM_LIMIT),
    )(*args)
    if (Mp, Np) != (M, N):
        out = out[:M, :N]
    return out


# ----------------------------------------------------------------------------
# Fused LayerNorm + linear (+ optional GELU).  Full K per block; grid over M, N.
# The normalized activations are cached in VMEM and only recomputed when the
# N-tile index is 0 (N axis is "arbitrary" so the cache is valid per core).
# ----------------------------------------------------------------------------
def _ln_linear_kernel(act, x_ref, g_ref, bb_ref, w_ref, b_ref, o_ref, h_ref):
    @pl.when(pl.program_id(1) == 0)
    def _():
        x = x_ref[...].astype(jnp.float32)
        mu = jnp.mean(x, axis=-1, keepdims=True)
        xc = x - mu
        var = jnp.mean(xc * xc, axis=-1, keepdims=True)
        h = xc * jax.lax.rsqrt(var + 1e-5)
        h = h * g_ref[...].astype(jnp.float32) + bb_ref[...].astype(jnp.float32)
        h_ref[...] = h.astype(jnp.bfloat16)

    y = jnp.dot(h_ref[...], w_ref[...].astype(jnp.bfloat16),
                preferred_element_type=jnp.float32)
    y = y + b_ref[...].astype(jnp.float32)
    if act == "gelu":
        y = _gelu(y)
    o_ref[...] = y.astype(o_ref.dtype)


def ln_linear(x, g, beta, w, b, act=None, out_dtype=jnp.bfloat16):
    M, K = x.shape
    N = w.shape[1]
    tm, Mp = _tile(M, _TM)
    tn, Np = _tile(N, _TN)

    xp = _pad_to(x, (Mp, K))
    wp = _pad_to(w, (K, Np))
    bp = _pad_to(b.reshape(1, N), (1, Np))

    out = pl.pallas_call(
        functools.partial(_ln_linear_kernel, act),
        out_shape=jax.ShapeDtypeStruct((Mp, Np), out_dtype),
        grid=(Mp // tm, Np // tn),
        in_specs=[
            pl.BlockSpec((tm, K), lambda i, j: (i, 0)),
            pl.BlockSpec((1, K), lambda i, j: (0, 0)),
            pl.BlockSpec((1, K), lambda i, j: (0, 0)),
            pl.BlockSpec((K, tn), lambda i, j: (0, j)),
            pl.BlockSpec((1, tn), lambda i, j: (0, j)),
        ],
        out_specs=pl.BlockSpec((tm, tn), lambda i, j: (i, j)),
        scratch_shapes=[pltpu.VMEM((tm, K), jnp.bfloat16)],
        compiler_params=pltpu.CompilerParams(
            dimension_semantics=("parallel", "arbitrary"),
            vmem_limit_bytes=_VMEM_LIMIT),
    )(xp, g.reshape(1, K), beta.reshape(1, K), wp, bp)
    if (Mp, Np) != (M, N):
        out = out[:M, :N]
    return out


# ----------------------------------------------------------------------------
# Standalone LayerNorm (vision ln_pre), row-tiled, bf16 out.
# ----------------------------------------------------------------------------
def _layernorm_kernel(x_ref, g_ref, b_ref, o_ref):
    x = x_ref[...].astype(jnp.float32)
    mu = jnp.mean(x, axis=-1, keepdims=True)
    xc = x - mu
    var = jnp.mean(xc * xc, axis=-1, keepdims=True)
    y = xc * jax.lax.rsqrt(var + 1e-5)
    o_ref[...] = (y * g_ref[...].astype(jnp.float32)
                  + b_ref[...].astype(jnp.float32)).astype(o_ref.dtype)


def layernorm(x, g, b, out_dtype=jnp.bfloat16):
    M, D = x.shape
    tm, Mp = _tile(M, _TM)
    xp = _pad_to(x, (Mp, D))
    out = pl.pallas_call(
        _layernorm_kernel,
        out_shape=jax.ShapeDtypeStruct((Mp, D), out_dtype),
        grid=(Mp // tm,),
        in_specs=[pl.BlockSpec((tm, D), lambda i: (i, 0)),
                  pl.BlockSpec((1, D), lambda i: (0, 0)),
                  pl.BlockSpec((1, D), lambda i: (0, 0))],
        out_specs=pl.BlockSpec((tm, D), lambda i: (i, 0)),
        compiler_params=pltpu.CompilerParams(
            dimension_semantics=("parallel",),
            vmem_limit_bytes=_VMEM_LIMIT),
    )(xp, g.reshape(1, D), b.reshape(1, D))
    if Mp != M:
        out = out[:M]
    return out


# ----------------------------------------------------------------------------
# Multi-head attention, one (batch, head) pair per grid step.
# Input block (1, S, 3*Dh) is lane-dense (last dim is the full array dim), the
# single head's (S,S) score tensor is the only large live temporary, and the
# output (1, S, Dh) is stored directly (no concat).
# TODO(synk): flash-style online softmax with a KV grid axis for S >> 1k;
# TODO(synk): pack two heads per contraction when Dh = 64 to feed the 256-wide MXU.
# ----------------------------------------------------------------------------
def _attention_kernel(scale, causal, qkv_ref, o_ref):
    qkv = qkv_ref[0]                      # (S, 3*Dh) bf16
    S = qkv.shape[0]
    Dh = qkv.shape[1] // 3
    q = qkv[:, :Dh].astype(jnp.bfloat16)
    k = qkv[:, Dh:2 * Dh].astype(jnp.bfloat16)
    v = qkv[:, 2 * Dh:].astype(jnp.bfloat16)

    # q @ k^T without materializing a transpose
    s = jax.lax.dot_general(q, k, (((1,), (1,)), ((), ())),
                            preferred_element_type=jnp.float32) * scale
    if causal:
        qi = jax.lax.broadcasted_iota(jnp.int32, (S, S), 0)
        ki = jax.lax.broadcasted_iota(jnp.int32, (S, S), 1)
        s = jnp.where(ki <= qi, s, -1e30)
    s = s - jnp.max(s, axis=-1, keepdims=True)
    p = jnp.exp(s)
    p = p * pl.reciprocal(jnp.sum(p, axis=-1, keepdims=True), approx=True)
    o_ref[0] = jnp.dot(p.astype(jnp.bfloat16), v,
                       preferred_element_type=jnp.float32).astype(o_ref.dtype)


def attention(qkv, heads, causal):
    """qkv: (B, S, 3*D) bf16 with layout [q | k | v], heads contiguous inside each."""
    B, S, D3 = qkv.shape
    D = D3 // 3
    Dh = D // heads
    scale = 1.0 / math.sqrt(Dh)

    # (B, S, 3, H, Dh) -> (B, H, S, 3, Dh) -> (B*H, S, 3*Dh)   (single bf16 transpose)
    qh = qkv.reshape(B, S, 3, heads, Dh)
    qh = jnp.transpose(qh, (0, 3, 1, 2, 4)).reshape(B * heads, S, 3 * Dh)

    out = pl.pallas_call(
        functools.partial(_attention_kernel, scale, causal),
        out_shape=jax.ShapeDtypeStruct((B * heads, S, Dh), jnp.bfloat16),
        grid=(B * heads,),
        in_specs=[pl.BlockSpec((1, S, 3 * Dh), lambda g: (g, 0, 0))],
        out_specs=pl.BlockSpec((1, S, Dh), lambda g: (g, 0, 0)),
        compiler_params=pltpu.CompilerParams(
            dimension_semantics=("parallel",),
            vmem_limit_bytes=_VMEM_LIMIT),
    )(qh)

    # (B*H, S, Dh) -> (B, S, H*Dh) head-merged, lane-dense for the out-projection.
    out = out.reshape(B, heads, S, Dh)
    out = jnp.transpose(out, (0, 2, 1, 3)).reshape(B, S, D)
    return out


# ----------------------------------------------------------------------------
# Fused tower tail: pooled LayerNorm -> projection (no bias) -> optional L2-norm.
# ----------------------------------------------------------------------------
def _ln_proj_norm_kernel(do_norm, x_ref, g_ref, bb_ref, w_ref, o_ref):
    x = x_ref[...].astype(jnp.float32)
    mu = jnp.mean(x, axis=-1, keepdims=True)
    xc = x - mu
    var = jnp.mean(xc * xc, axis=-1, keepdims=True)
    h = xc * jax.lax.rsqrt(var + 1e-5)
    h = h * g_ref[...].astype(jnp.float32) + bb_ref[...].astype(jnp.float32)
    y = jnp.dot(h.astype(jnp.bfloat16), w_ref[...].astype(jnp.bfloat16),
                preferred_element_type=jnp.float32)
    if do_norm:
        y = y * jax.lax.rsqrt(jnp.sum(y * y, axis=-1, keepdims=True) + 1e-12)
    o_ref[...] = y.astype(o_ref.dtype)


def ln_proj_norm(x, g, beta, w, do_norm):
    B, D = x.shape
    E = w.shape[1]
    return pl.pallas_call(
        functools.partial(_ln_proj_norm_kernel, bool(do_norm)),
        out_shape=jax.ShapeDtypeStruct((B, E), jnp.float32),
        compiler_params=pltpu.CompilerParams(vmem_limit_bytes=_VMEM_LIMIT),
    )(x, g.reshape(1, D), beta.reshape(1, D), w)


# ----------------------------------------------------------------------------
# Transformer block (fused LN+QKV, per-head attention grid, fused residual adds)
# Residual stream is bf16 end to end.
# ----------------------------------------------------------------------------
def transformer_block(x, p, heads, causal):
    B, S, D = x.shape
    x2 = x.reshape(B * S, D)                                                   # bf16
    qkv = ln_linear(x2, p["ln1_g"], p["ln1_b"], p["w_qkv"], p["b_qkv"])        # (B*S, 3D) bf16
    attn = attention(qkv.reshape(B, S, 3 * D), heads, causal)                  # (B, S, D) bf16
    x2 = linear(attn.reshape(B * S, D), p["w_o"], p["b_o"], residual=x2)       # + residual
    h = ln_linear(x2, p["ln2_g"], p["ln2_b"], p["w_fc"], p["b_fc"], act="gelu")
    x2 = linear(h, p["w_proj"], p["b_proj"], residual=x2)                      # + residual
    return x2.reshape(B, S, D)


# ----------------------------------------------------------------------------
# Synthetic CLIP (deterministic init; mirrors open_clip's encode_image /
# encode_text signatures of the wrapped model in customized_CLIP)
# ----------------------------------------------------------------------------
class CustomizedCLIP:
    def __init__(self, cfg):
        self.width = cfg["width"]
        self.heads = cfg["heads"]
        self.layers = cfg["layers"]
        self.embed_dim = cfg["embed_dim"]
        self.patch = cfg["patch"]
        self.image_size = cfg["image_size"]
        self.in_chans = cfg["in_chans"]
        self.vocab = cfg["vocab"]
        self.ctx_len = cfg["ctx_len"]

        key = jax.random.PRNGKey(0)
        ks = iter(jax.random.split(key, 256))

        def nrm(shape):
            return 0.02 * jax.random.normal(next(ks), shape, jnp.float32)

        def wgt(shape):
            # TODO(synk): fp8 weight storage on v7x (bf16 elsewhere) for 2x MXU.
            return nrm(shape).astype(jnp.bfloat16)

        D, E = self.width, self.embed_dim
        n_patches = (self.image_size // self.patch) ** 2
        patch_dim = self.in_chans * self.patch * self.patch

        def block_params():
            return {
                "ln1_g": jnp.ones((D,), jnp.float32),
                "ln1_b": jnp.zeros((D,), jnp.float32),
                "w_qkv": wgt((D, 3 * D)), "b_qkv": jnp.zeros((3 * D,), jnp.float32),
                "w_o": wgt((D, D)), "b_o": jnp.zeros((D,), jnp.float32),
                "ln2_g": jnp.ones((D,), jnp.float32),
                "ln2_b": jnp.zeros((D,), jnp.float32),
                "w_fc": wgt((D, 4 * D)), "b_fc": jnp.zeros((4 * D,), jnp.float32),
                "w_proj": wgt((4 * D, D)), "b_proj": jnp.zeros((D,), jnp.float32),
            }

        self.params = {
            # visual tower
            "patch_w": wgt((patch_dim, D)),
            "patch_b": jnp.zeros((D,), jnp.float32),   # conv1 has no bias in open_clip
            "cls_tok": nrm((D,)),
            "vis_pos": nrm((n_patches + 1, D)),
            "vis_ln_pre_g": jnp.ones((D,), jnp.float32),
            "vis_ln_pre_b": jnp.zeros((D,), jnp.float32),
            "vis_blocks": [block_params() for _ in range(self.layers)],
            "vis_ln_post_g": jnp.ones((D,), jnp.float32),
            "vis_ln_post_b": jnp.zeros((D,), jnp.float32),
            "vis_proj": wgt((D, E)),
            # text tower
            "tok_emb": nrm((self.vocab, D)),
            "txt_pos": nrm((self.ctx_len, D)),
            "txt_blocks": [block_params() for _ in range(self.layers)],
            "txt_ln_final_g": jnp.ones((D,), jnp.float32),
            "txt_ln_final_b": jnp.zeros((D,), jnp.float32),
            "txt_proj": wgt((D, E)),
        }

    # ---- image tower (ViT) --------------------------------------------------
    def encode_image(self, image, norm=True):
        # image: (B, C, H, W) -- NCHW, PyTorch convention
        p = self.params
        B, C, H, W = image.shape
        ph = self.patch
        gh, gw = H // ph, W // ph
        # patchify (equivalent to the stride=patch conv1) -> (B*P, C*ph*ph)
        # TODO(synk): fold this 6-D transpose into the patch-embedding kernel.
        x = image.reshape(B, C, gh, ph, gw, ph)
        x = jnp.transpose(x, (0, 2, 4, 1, 3, 5)).reshape(B * gh * gw, C * ph * ph)
        D = self.width
        x = linear(x, p["patch_w"], p["patch_b"]).reshape(B, gh * gw, D)      # bf16
        cls = jnp.broadcast_to(p["cls_tok"].reshape(1, 1, D).astype(jnp.bfloat16),
                               (B, 1, D))
        x = jnp.concatenate([cls, x], axis=1) + p["vis_pos"][None].astype(jnp.bfloat16)
        S = x.shape[1]
        x = layernorm(x.reshape(B * S, D),
                      p["vis_ln_pre_g"], p["vis_ln_pre_b"]).reshape(B, S, D)
        for bp in p["vis_blocks"]:
            x = transformer_block(x, bp, self.heads, causal=False)
        pooled = x[:, 0, :]                                                   # CLS token
        return ln_proj_norm(pooled, p["vis_ln_post_g"], p["vis_ln_post_b"],
                            p["vis_proj"], norm)

    # ---- text tower ---------------------------------------------------------
    def encode_text(self, text, norm=True):
        # text: (B, S) int32 token ids
        p = self.params
        B, S = text.shape
        D = self.width
        # token-embedding gather stays in plain JAX (no clean Pallas equivalent here)
        x = (jnp.take(p["tok_emb"], text, axis=0)
             + p["txt_pos"][None, :S]).astype(jnp.bfloat16)                   # (B, S, D)
        for bp in p["txt_blocks"]:
            x = transformer_block(x, bp, self.heads, causal=True)
        # CLIP pools at the argmax (EOT) token; LayerNorm is per-row so it
        # commutes with row selection -> pool first, then fused LN+proj+L2norm.
        eot = jnp.argmax(text, axis=-1)
        pooled = x[jnp.arange(B), eot]                                        # (B, D)
        return ln_proj_norm(pooled, p["txt_ln_final_g"], p["txt_ln_final_b"],
                            p["txt_proj"], norm)

    def forward(self):
        # Mirrors the PyTorch module: forward() is a no-op (pass).
        return None


# ----------------------------------------------------------------------------
if __name__ == "__main__":
    cfg = {
        "width": 32, "heads": 4, "layers": 2, "embed_dim": 32,
        "patch": 8, "image_size": 16, "in_chans": 3,
        "vocab": 64, "ctx_len": 8,
        # fields present in the original cfg but unused for synthetic weights:
        "clip_name": "synthetic-ViT", "clip_ckpt": None, "clip_cache": None,
    }
    # TODO(synk): benchmark/tune at real CLIP widths (D=512/768/1024, S=77/197/577);
    # the toy config below is only a correctness smoke test.
    model = CustomizedCLIP(cfg)

    key = jax.random.PRNGKey(0)
    k_img, k_txt = jax.random.split(key)
    image = jax.random.normal(k_img, (2, 3, 16, 16), jnp.float32)        # NCHW
    text = jax.random.randint(k_txt, (2, 8), 0, cfg["vocab"], jnp.int32)

    img_feats = model.encode_image(image, norm=True)
    txt_feats = model.encode_text(text, norm=True)
    jax.block_until_ready((img_feats, txt_feats))

    assert img_feats.shape == (2, cfg["embed_dim"])
    assert txt_feats.shape == (2, cfg["embed_dim"])
    assert bool(jnp.all(jnp.isfinite(img_feats))) and bool(jnp.all(jnp.isfinite(txt_feats)))
    print("KERNEL_OK")
</pallas_src>

<mosaic_0001>
module attributes {stable_mosaic.version = 11 : i64} {
  func.func @_linear_kernel(%arg0: i32, %arg1: i32, %arg2: i32, %arg3: memref<8x192xf32, #tpu.memory_space<vmem>>, %arg4: memref<192x32xbf16, #tpu.memory_space<vmem>>, %arg5: memref<1x32xf32, #tpu.memory_space<vmem>>, %arg6: memref<8x32xbf16, #tpu.memory_space<vmem>>, %arg7: memref<8x32xf32, #tpu.memory_space<vmem>>) attributes {dimension_semantics = [#tpu.dimension_semantics<parallel>, #tpu.dimension_semantics<parallel>, #tpu.dimension_semantics<arbitrary>], iteration_bounds = array<i64: 1, 1, 1>, scalar_prefetch = 0 : i64, scratch_operands = 1 : i64, tpu.core_type = #tpu.core_type<tc>, window_params = [{transform_indices = @transform_0, window_bounds = array<i64: 8, 192>}, {transform_indices = @transform_1, window_bounds = array<i64: 192, 32>}, {transform_indices = @transform_2, window_bounds = array<i64: 1, 32>}, {transform_indices = @transform_3, window_bounds = array<i64: 8, 32>}]} {
    %c0_i32 = arith.constant 0 : i32
    %0 = arith.cmpi eq, %arg2, %c0_i32 : i32
    %1 = arith.extui %0 : i1 to i32
    %c0_i32_0 = arith.constant 0 : i32
    %2 = arith.cmpi ne, %1, %c0_i32_0 : i32
    scf.if %2 {
      %cst_10 = arith.constant 0.000000e+00 : f32
      %13 = vector.broadcast %cst_10 : f32 to vector<8x32xf32>
      %c0_11 = arith.constant 0 : index
      %c0_12 = arith.constant 0 : index
      %14 = vector.load %arg7[%c0_11, %c0_12] : memref<8x32xf32, #tpu.memory_space<vmem>>, vector<8x32xf32>
      tpu.vector_store %arg7[%c0_11, %c0_12], %13 {strides = array<i32>} : memref<8x32xf32, #tpu.memory_space<vmem>>, vector<8x32xf32>,
    } else {
    }
    %c0 = arith.constant 0 : index
    %c0_1 = arith.constant 0 : index
    %3 = vector.load %arg7[%c0, %c0_1] : memref<8x32xf32, #tpu.memory_space<vmem>>, vector<8x32xf32>
    %c0_2 = arith.constant 0 : index
    %c0_3 = arith.constant 0 : index
    %4 = vector.load %arg3[%c0_2, %c0_3] : memref<8x192xf32, #tpu.memory_space<vmem>>, vector<8x192xf32>
    %5 = arith.truncf %4 : vector<8x192xf32> to vector<8x192xbf16>
    %c0_4 = arith.constant 0 : index
    %c0_5 = arith.constant 0 : index
    %6 = vector.load %arg4[%c0_4, %c0_5] : memref<192x32xbf16, #tpu.memory_space<vmem>>, vector<192x32xbf16>
    %cst = arith.constant dense<0.000000e+00> : vector<8x32xf32>
    %7 = tpu.matmul %5, %6, %cst {dimension_numbers = #tpu.dot_dimension_numbers<[1], [0], [0], [1], [0, 0, 1, 1], [], []>} : vector<8x192xbf16>, vector<192x32xbf16>, vector<8x32xf32> -> vector<8x32xf32>
    %8 = arith.addf %3, %7 : vector<8x32xf32>
    %c0_6 = arith.constant 0 : index
    %c0_7 = arith.constant 0 : index
    %9 = vector.load %arg7[%c0_6, %c0_7] : memref<8x32xf32, #tpu.memory_space<vmem>>, vector<8x32xf32>
    tpu.vector_store %arg7[%c0_6, %c0_7], %8 {strides = array<i32>} : memref<8x32xf32, #tpu.memory_space<vmem>>, vector<8x32xf32>,
    %c0_i32_8 = arith.constant 0 : i32
    %10 = arith.cmpi eq, %arg2, %c0_i32_8 : i32
    %11 = arith.extui %10 : i1 to i32
    %c0_i32_9 = arith.constant 0 : i32
    %12 = arith.cmpi ne, %11, %c0_i32_9 : i32
    scf.if %12 {
      %c0_10 = arith.constant 0 : index
      %c0_11 = arith.constant 0 : index
      %13 = vector.load %arg7[%c0_10, %c0_11] : memref<8x32xf32, #tpu.memory_space<vmem>>, vector<8x32xf32>
      %c0_12 = arith.constant 0 : index
      %c0_13 = arith.constant 0 : index
      %14 = vector.load %arg5[%c0_12, %c0_13] : memref<1x32xf32, #tpu.memory_space<vmem>>, vector<1x32xf32>
      %15 = vector.broadcast %14 : vector<1x32xf32> to vector<8x32xf32>
      %16 = arith.addf %13, %15 : vector<8x32xf32>
      %17 = arith.truncf %16 : vector<8x32xf32> to vector<8x32xbf16>
      %c0_14 = arith.constant 0 : index
      %c0_15 = arith.constant 0 : index
      %18 = vector.load %arg6[%c0_14, %c0_15] : memref<8x32xbf16, #tpu.memory_space<vmem>>, vector<8x32xbf16>
      tpu.vector_store %arg6[%c0_14, %c0_15], %17 {strides = array<i32>} : memref<8x32xbf16, #tpu.memory_space<vmem>>, vector<8x32xbf16>,
    } else {
    }
    return
  }
  func.func @transform_0(%arg0: i32, %arg1: i32, %arg2: i32) -> (i32, i32) {
    %c0_i32 = arith.constant 0 : i32
    return %arg0, %arg2 : i32, i32
  }
  func.func @transform_1(%arg0: i32, %arg1: i32, %arg2: i32) -> (i32, i32) {
    %c0_i32 = arith.constant 0 : i32
    return %arg2, %arg1 : i32, i32
  }
  func.func @transform_2(%arg0: i32, %arg1: i32, %arg2: i32) -> (i32, i32) {
    %c0_i32 = arith.constant 0 : i32
    %c0_i32_0 = arith.constant 0 : i32
    return %c0_i32, %arg1 : i32, i32
  }
  func.func @transform_3(%arg0: i32, %arg1: i32, %arg2: i32) -> (i32, i32) {
    %c0_i32 = arith.constant 0 : i32
    return %arg0, %arg1 : i32, i32
  }
}

</mosaic_0001>

<bundles_post_ra>
// kernel: tpu_custom_call.1
= control target key start
LH: loop header
LB: loop body
LE: loop exit
PB: predicated region body
PF: predicated region fallthrough
CT: control target
= control target key end

     0   :  { %v252_v1 = vmov 0   ;;  %vm20_vm0 = vcmask 261120   ;;  %v253_v3 = vmov 0.0   ;;  %vm123_vm1 = vcmask 523264   ;;  %s334_s0 = inlined_call_operand.vmem [shape: f32[8,192], index: 0, kind: input, shape index: {}]   ;;  %s335_s1 = inlined_call_operand.vmem [shape: bf16[192,32], index: 1, kind: input, shape index: {}]   ;;  %s336_s2 = inlined_call_operand.vmem [shape: f32[1,32], index: 2, kind: input, shape index: {}]   ;;  %s337_s3 = inlined_call_operand.hbm [shape: bf16[8,32], index: 3, kind: output, shape index: {}]  }
   0x1   :  { %v216_v0 = vld [vmem:[%s335_s1] sm:$0xff]   ;;  %127 = vmatprep.subr.bf16.mxu0 %v252_v1  ;;  %v217_v2 = vld [vmem:[%s335_s1 + $0x8] sm:$0xff]   ;;  %21 = vst.msk [vmem:[#allocation2] sm:$0xff] %vm20_vm0, %v253_v3  ;;  %v218_v4 = vld [vmem:[%s335_s1 + $0x10] sm:$0xff]  }
   0x2   :  { %128 = vmatpush1.bf16.msra.mxu0 %v216_v0  ;;  %v219_v5 = vld [vmem:[%s335_s1 + $0x18] sm:$0xff]   ;;  %v24_v6 = vld [vmem:[%s334_s0 + $0x8] sm:$0xff] }
   0x3   :  { %129 = vmatprep.subr.bf16.mxu0 %v252_v1  ;;  %v26_v7 = vpack.c.bf16 %v24_v6, %v24_v6 }
   0x6   :  { %130 = vmatpush1.bf16.msra.mxu0 %v217_v2 }
   0x7   :  { %131 = vmatprep.subr.bf16.mxu0 %v252_v1 }
   0xa   :  { %132 = vmatpush1.bf16.msra.mxu0 %v218_v4 }
   0xb   :  { %133 = vmatprep.subr.bf16.mxu0 %v252_v1 }
   0xc   :  { %8 = vsyncpa [#allocation4], 0  ;;  %v220_v8 = vld [vmem:[%s335_s1 + $0x20] sm:$0xff]   ;;  %211 = vmatprep.mubr.msk.bf16.mxu0 %vm123_vm1, %v26_v7  ;;  %v221_v9 = vld [vmem:[%s335_s1 + $0x28] sm:$0xff]   ;;  %vm183_vm2 = vcmask 257024  }
   0xd   :  { %v222_v10 = vld [vmem:[%s335_s1 + $0x30] sm:$0xff]   ;;  %v223_v11 = vld [vmem:[%s335_s1 + $0x38] sm:$0xff]   ;;  %v224_v12 = vld [vmem:[%s335_s1 + $0x40] sm:$0xff]  }
   0xe   :  { %134 = vmatpush1.bf16.msra.mxu0 %v219_v5  ;;  %v225_v13 = vld [vmem:[%s335_s1 + $0x48] sm:$0xff]   ;;  %v226_v14 = vld [vmem:[%s335_s1 + $0x50] sm:$0xff]   ;;  %v227_v15 = vld [vmem:[%s335_s1 + $0x58] sm:$0xff]   ;;  %s254_s1 = smov [#allocation3]  }
   0xf   :  { %135 = vmatprep.subr.bf16.mxu0 %v252_v1  ;;  %v23_v16 = vld [vmem:[%s334_s0] sm:$0xff]  ;;  %s191_s15 = sshll.u32 %s254_s1, 4  ;;  %s192_s15 = int_to_ptr.vmem [resolvable:$true] %s191_s15 }
  0x10   :  { %v25_v17 = vpack.c.bf16 %v23_v16, %v23_v16  ;;  %v22_v18 = vld [vmem:[#allocation2] sm:$0xff]  ;;  %s228_s0 = scalar_lea.vmem %s192_s15, 64  ;;  %p233_p1 = scmp.lt.s32.totalorder %s192_s15, %s192_s15 }
  0x11   :  { %v212_v24 = vld [vmem:[%s336_s2] ss:$0 sm:$0xff]  ;;  %p229_p0 = scmp.ne.s32.totalorder %s192_s15, %s228_s0  ;;  %p234_p2 = scmp.lt.s32.totalorder %s228_s0, %s228_s0 }
  0x12   :  { %136 = vmatpush1.bf16.msra.mxu0 %v220_v8 }
  0x13   :  { %137 = vmatprep.subr.bf16.mxu0 %v252_v1  ;;  %p235_p3 = por %p234_p2, %p233_p1 }
  0x15   :  { %p236_p4 = pnand %p235_p3, %p229_p0 }
  0x16   :  { %138 = vmatpush1.bf16.msra.mxu0 %v221_v9 }
  0x17   :  { %139 = vmatprep.subr.bf16.mxu0 %v252_v1 }
  0x1a   :  { %140 = vmatpush1.bf16.msra.mxu0 %v222_v10 }
  0x1b   :  { %141 = vmatprep.subr.bf16.mxu0 %v252_v1 }
  0x1e   :  { %142 = vmatpush1.bf16.msra.mxu0 %v223_v11 }
  0x1f   :  { %143 = vmatprep.subr.bf16.mxu0 %v252_v1 }
  0x22   :  { %144 = vmatpush1.bf16.msra.mxu0 %v224_v12 }
  0x23   :  { %145 = vmatprep.subr.bf16.mxu0 %v252_v1 }
  0x26   :  { %146 = vmatpush1.bf16.msra.mxu0 %v225_v13 }
  0x27   :  { %147 = vmatprep.subr.bf16.mxu0 %v252_v1 }
  0x2a   :  { %148 = vmatpush1.bf16.msra.mxu0 %v226_v14 }
  0x2b   :  { %149 = vmatprep.subr.bf16.mxu0 %v252_v1 }
  0x2e   :  { %150 = vmatpush1.bf16.msra.mxu0 %v227_v15 }
  0x31   :  { %160 = vmatmul.mubr.bf16.vlgmr.msra.gmra.mrb[0].mxu0 %v25_v17 }
 0x104   :  { %v161_v19 = vpop.f32.mrb[0].mxu0 }
 0x105   :  { %v167_v20 = vadd.f32 %v161_v19, %v22_v18  ;;  %v163_v21 = vpop.f32.mrb[1].mxu0 }
 0x106   :  { %v164_v22 = vpop.f32.mrb[2].mxu0 }
 0x107   :  { %169 = vst.msk [vmem:[#allocation2] sm:$0xff] %vm20_vm0, %v167_v20  ;;  %v165_v23 = vpop.f32.mrb[3].mxu0 }
 0x10e   :  { %v173_v25 = vld [vmem:[#allocation2] sm:$0xff] }
 0x10f   :  { %v181_v26 = vadd.f32 %v212_v24, %v173_v25 }
 0x111   :  { %v182_v27 = vpack.c.bf16 %v181_v26, %v181_v26 }
 0x113   :  { %184 = vst.msk [vmem:[#allocation3] sm:$0xf] %vm183_vm2, %v182_v27 }
 0x114   :  { %239 = shalt.err (!%p236_p4)
}
 0x115   :  { %s240_s18 = scalar_lea.hbm %s337_s3, 64 }
 0x116   :  { %p241_p5 = scmp.ne.s32.totalorder %s337_s3, %s240_s18  ;;  %p244_p6 = scmp.lt.u32.totalorder %s240_s18, %s337_s3 }
 0x118   :  { %p246_p7 = pnand %p244_p6, %p241_p5 }
 0x11a   :  { %249 = shalt.err (!%p246_p7)
}
 0x11b   :  { %194 = dma.vmem_to_hbm [thread:$0]  %s192_s15, 64, %s337_s3, [#allocation4]  }
 0x11c   :  { %250 = dma.done.wait [#allocation4], 64  }
 0x11d   :  { %251 = vsyncadd [#allocation4], 4294967232 }
 0x11e   :  { %198 = vsyncpa [#allocation4], 1 }

</bundles_post_ra>
